<compile_context>
chip_gen: v6e
topology: v6e:2x2x1
jax: 0.10.0
libtpu: 0.0.40
codegen_flags: <defaults>
</compile_context>

<pallas_src>
import jax
import jax.numpy as jnp
from jax.experimental import pallas as pl
from jax.experimental.pallas import tpu as pltpu

SQRT_2_OVER_PI = 0.7978845608028654
GELU_C = 0.044715


def _round_up(x, m):
    return (x + m - 1) // m * m


def _gelu_and_grad(h):
    """tanh-approx GELU and its derivative (primal + tangent chain rule)."""
    u = SQRT_2_OVER_PI * (h + GELU_C * h * h * h)
    t = jnp.tanh(u)
    g = 0.5 * h * (1.0 + t)
    du = SQRT_2_OVER_PI * (1.0 + 3.0 * GELU_C * h * h)
    dg = 0.5 * (1.0 + t) + 0.5 * h * (1.0 - t * t) * du
    return g, dg


def _linearized_encoder_kernel(p_ref, w1_ref, b1_ref, wh_ref, b2_ref, o_ref):
    # p_ref block: (TB, N, K) -> TB samples per grid step.
    tb, n, k = p_ref.shape
    dp = wh_ref.shape[0] // 2          # padded hidden width

    # one wide patch-embed matmul: columns [0:dp) = primal h, [dp:2dp) = dh.
    # reshape merges leading dims only (N % 8 == 0 -> layout-free).
    p = p_ref[...].reshape(tb * n, k)
    hd = jnp.dot(p, w1_ref[...], preferred_element_type=jnp.float32) + b1_ref[...]
    h = hd[:, :dp]
    dh = hd[:, dp:]

    # GELU primal + tangent
    a, dg = _gelu_and_grad(h)
    da = dg * dh

    # per-sample sum over patches (1/N already folded into the head weights)
    m = a.reshape(tb, n, dp).sum(axis=1)           # (TB, Dp)
    dm = da.reshape(tb, n, dp).sum(axis=1)         # (TB, Dp)
    s = jnp.concatenate([m, dm], axis=-1)          # (TB, 2Dp)

    # head: one dot computes  m@W2^T + dm@W2_0^T  (== y + dy, product rule folded)
    o_ref[...] = (jnp.dot(s, wh_ref[...], preferred_element_type=jnp.float32)
                  + b2_ref[...]).astype(o_ref.dtype)


def patchify(x, patch):
    """NCHW -> (B, N, C*P*P), matching conv-patch-embed weight flattening."""
    # TODO(synk): move patch extraction into the kernel (memory_space=pl.ANY +
    # in-VMEM assembly) to avoid this pre-kernel HBM transpose round trip.
    B, C, H, W = x.shape
    gh, gw = H // patch, W // patch
    x = x.reshape(B, C, gh, patch, gw, patch)
    x = x.transpose(0, 2, 4, 1, 3, 5)              # (B, gh, gw, C, P, P)
    return x.reshape(B, gh * gw, C * patch * patch)


def pack_linearized_params(params, params0, n_patches):
    """Call-invariant weight repack -- do this ONCE per weight set.

      w1cat = [ W1_0^T | dW1^T ]         (K, 2*Dp)
      b1cat = [ b1_0   | db1   ]         (1, 2*Dp)
      wh    = [ W2^T ; W2_0^T ] / N      (2*Dp, Ep)  (product rule + mean-pool folded)
      b2p   = b2                         (1, Ep)
    """
    w1, b1, w2, b2 = params
    w1_0, b1_0, w2_0, b2_0 = params0
    D, K = w1.shape
    E = w2.shape[0]
    Dp = _round_up(D, 128)
    Ep = _round_up(E, 128)

    dw1 = (w1 - w1_0).astype(jnp.float32)
    db1 = (b1 - b1_0).astype(jnp.float32)

    w1cat = jnp.zeros((K, 2 * Dp), jnp.float32)
    w1cat = w1cat.at[:, :D].set(w1_0.T.astype(jnp.float32))
    w1cat = w1cat.at[:, Dp:Dp + D].set(dw1.T)
    b1cat = jnp.zeros((1, 2 * Dp), jnp.float32)
    b1cat = b1cat.at[0, :D].set(b1_0)
    b1cat = b1cat.at[0, Dp:Dp + D].set(db1)

    inv_n = 1.0 / n_patches
    wh = jnp.zeros((2 * Dp, Ep), jnp.float32)
    wh = wh.at[:D, :E].set(w2.T.astype(jnp.float32) * inv_n)
    wh = wh.at[Dp:Dp + D, :E].set(w2_0.T.astype(jnp.float32) * inv_n)
    b2p = jnp.zeros((1, Ep), jnp.float32).at[0, :E].set(b2)

    return dict(w1cat=w1cat, b1cat=b1cat, wh=wh, b2p=b2p, D=D, E=E, K=K)


def _pick_tb(B, N, K, Dp, Ep, block_b, vmem_budget=24 * 1024 * 1024):
    """Largest batch tile (multiple of 8) fitting a v7x-safe VMEM budget,
    while keeping >= 2 grid blocks when the batch allows (megacore split)."""
    f32 = 4
    # double-buffered weight blocks are batch-independent
    fixed = 2 * f32 * (K * 2 * Dp + 2 * Dp + 2 * Dp * Ep + Ep)
    # per batch row: 2x input block (double-buffered) + ~5 fused f32
    # temporaries (hd, a, dg, da, ...) + 2x output block
    per_row = f32 * (2 * N * K + 5 * N * 2 * Dp + 2 * Ep)
    cap = max(8, ((vmem_budget - fixed) // per_row) // 8 * 8)
    tb = max(8, (min(block_b, cap) // 8) * 8)
    # keep at least 2 grid blocks so both v7x TensorCores get work
    while tb > 8 and pl.cdiv(B, tb) < 2:
        tb = max(8, ((tb // 2) // 8) * 8)
    return tb


def linearized_image_encoder(x, packed, patch, block_b=256):
    """out = f(params0, x) + JVP(f, params0; params - params0), via Pallas."""
    w1cat, b1cat, wh, b2p = packed["w1cat"], packed["b1cat"], packed["wh"], packed["b2p"]
    E = packed["E"]

    p = patchify(x, patch).astype(jnp.float32)
    B, N, K = p.shape
    assert N % 8 == 0, "patch count per image must be a multiple of 8"
    assert K == packed["K"]
    Dp = b1cat.shape[1] // 2
    Ep = wh.shape[1]

    tb = _pick_tb(B, N, K, Dp, Ep, block_b)
    B_pad = _round_up(B, tb)
    if B_pad != B:
        # zero SAMPLE rows are safe: their outputs are discarded below.
        p = jnp.pad(p, ((0, B_pad - B), (0, 0), (0, 0)))

    # explicit VMEM limit: block footprint + headroom (<= 48 MiB, v7x-safe)
    f32 = 4
    block_bytes = f32 * (2 * tb * N * K
                         + 2 * (K * 2 * Dp + 2 * Dp + 2 * Dp * Ep + Ep)
                         + 2 * tb * Ep
                         + 6 * tb * N * 2 * Dp)
    vmem_limit = int(min(48 * 1024 * 1024, max(32 * 1024 * 1024, 2 * block_bytes)))

    out = pl.pallas_call(
        _linearized_encoder_kernel,
        out_shape=jax.ShapeDtypeStruct((B_pad, Ep), jnp.float32),
        grid=(B_pad // tb,),
        in_specs=[
            pl.BlockSpec((tb, N, K), lambda b: (b, 0, 0)),    # patches (no K pad)
            pl.BlockSpec((K, 2 * Dp), lambda b: (0, 0)),      # [W1_0^T | dW1^T]
            pl.BlockSpec((1, 2 * Dp), lambda b: (0, 0)),      # [b1_0 | db1]
            pl.BlockSpec((2 * Dp, Ep), lambda b: (0, 0)),     # [W2^T ; W2_0^T]/N
            pl.BlockSpec((1, Ep), lambda b: (0, 0)),          # b2
        ],
        out_specs=pl.BlockSpec((tb, Ep), lambda b: (b, 0)),
        compiler_params=pltpu.CompilerParams(
            dimension_semantics=("parallel",),
            vmem_limit_bytes=vmem_limit),
    )(p, w1cat, b1cat, wh, b2p)
    return out[:B, :E]


# ---- pure-JAX reference (same role as torch.func.jvp in LinearizedModel) ----
def _encoder_fn(params, p):
    w1, b1, w2, b2 = params
    h = jnp.einsum('bnk,dk->bnd', p, w1) + b1
    a = 0.5 * h * (1.0 + jnp.tanh(SQRT_2_OVER_PI * (h + GELU_C * h ** 3)))
    m = jnp.mean(a, axis=1)
    return jnp.einsum('bd,ed->be', m, w2) + b2


if __name__ == "__main__":
    key = jax.random.PRNGKey(0)
    B, C, H, W = 16, 4, 16, 16
    P, D, E = 4, 32, 32
    K = C * P * P
    N = (H // P) * (W // P)

    ks = jax.random.split(key, 9)
    x = jax.random.normal(ks[0], (B, C, H, W), jnp.float32)

    # init (params0) and "trained" (params) weights, deterministic
    w1_0 = 0.02 * jax.random.normal(ks[1], (D, K), jnp.float32)
    b1_0 = 0.02 * jax.random.normal(ks[2], (D,), jnp.float32)
    w2_0 = 0.02 * jax.random.normal(ks[3], (E, D), jnp.float32)
    b2_0 = 0.02 * jax.random.normal(ks[4], (E,), jnp.float32)
    w1 = w1_0 + 0.01 * jax.random.normal(ks[5], (D, K), jnp.float32)
    b1 = b1_0 + 0.01 * jax.random.normal(ks[6], (D,), jnp.float32)
    w2 = w2_0 + 0.01 * jax.random.normal(ks[7], (E, D), jnp.float32)
    b2 = b2_0 + 0.01 * jax.random.normal(ks[8], (E,), jnp.float32)

    params = (w1, b1, w2, b2)
    params0 = (w1_0, b1_0, w2_0, b2_0)

    # repack once (call-invariant), then run the Pallas forward
    packed = jax.tree_util.tree_map(jax.block_until_ready,
                                    pack_linearized_params(params, params0, N))
    out = linearized_image_encoder(x, packed, P)
    out = jax.block_until_ready(out)

    # reference: out + jvp, same semantics as LinearizedModel.__call__
    p = patchify(x, P)
    dparams = tuple(a - b for a, b in zip(params, params0))
    out0, dp = jax.jvp(lambda prm: _encoder_fn(prm, p), (params0,), (dparams,))
    ref = out0 + dp

    assert out.shape == (B, E)
    assert jnp.allclose(out, ref, atol=1e-4, rtol=1e-4), \
        float(jnp.max(jnp.abs(out - ref)))
    print("KERNEL_OK")
</pallas_src>

<mosaic_0001>
module attributes {stable_mosaic.version = 11 : i64} {
  func.func @_linearized_encoder_kernel(%arg0: i32, %arg1: memref<8x16x64xf32, #tpu.memory_space<vmem>>, %arg2: memref<64x256xf32, #tpu.memory_space<vmem>>, %arg3: memref<1x256xf32, #tpu.memory_space<vmem>>, %arg4: memref<256x128xf32, #tpu.memory_space<vmem>>, %arg5: memref<1x128xf32, #tpu.memory_space<vmem>>, %arg6: memref<8x128xf32, #tpu.memory_space<vmem>>) attributes {dimension_semantics = [#tpu.dimension_semantics<parallel>], iteration_bounds = array<i64: 2>, scalar_prefetch = 0 : i64, scratch_operands = 0 : i64, tpu.core_type = #tpu.core_type<tc>, window_params = [{transform_indices = @transform_0, window_bounds = array<i64: 8, 16, 64>}, {pipeline_mode = #tpu.pipeline_mode<synchronous>, transform_indices = @transform_1, window_bounds = array<i64: 64, 256>}, {pipeline_mode = #tpu.pipeline_mode<synchronous>, transform_indices = @transform_2, window_bounds = array<i64: 1, 256>}, {pipeline_mode = #tpu.pipeline_mode<synchronous>, transform_indices = @transform_3, window_bounds = array<i64: 256, 128>}, {pipeline_mode = #tpu.pipeline_mode<synchronous>, transform_indices = @transform_4, window_bounds = array<i64: 1, 128>}, {transform_indices = @transform_5, window_bounds = array<i64: 8, 128>}]} {
    %c0 = arith.constant 0 : index
    %c0_0 = arith.constant 0 : index
    %c0_1 = arith.constant 0 : index
    %0 = vector.load %arg1[%c0, %c0_0, %c0_1] : memref<8x16x64xf32, #tpu.memory_space<vmem>>, vector<8x16x64xf32>
    %1 = vector.shape_cast %0 : vector<8x16x64xf32> to vector<128x64xf32>
    %c0_2 = arith.constant 0 : index
    %c0_3 = arith.constant 0 : index
    %2 = vector.load %arg2[%c0_2, %c0_3] : memref<64x256xf32, #tpu.memory_space<vmem>>, vector<64x256xf32>
    %cst = arith.constant dense<0.000000e+00> : vector<128x256xf32>
    %3 = tpu.matmul %1, %2, %cst {dimension_numbers = #tpu.dot_dimension_numbers<[1], [0], [0], [1], [0, 0, 1, 1], [], []>} : vector<128x64xf32>, vector<64x256xf32>, vector<128x256xf32> -> vector<128x256xf32>
    %c0_4 = arith.constant 0 : index
    %c0_5 = arith.constant 0 : index
    %4 = vector.load %arg3[%c0_4, %c0_5] : memref<1x256xf32, #tpu.memory_space<vmem>>, vector<1x256xf32>
    %5 = vector.broadcast %4 : vector<1x256xf32> to vector<128x256xf32>
    %6 = arith.addf %3, %5 : vector<128x256xf32>
    %7 = vector.extract_strided_slice %6 {offsets = [0, 0], sizes = [128, 128], strides = [1, 1]} : vector<128x256xf32> to vector<128x128xf32>
    %8 = vector.extract_strided_slice %6 {offsets = [0, 128], sizes = [128, 128], strides = [1, 1]} : vector<128x256xf32> to vector<128x128xf32>
    %cst_6 = arith.constant 4.471500e-02 : f32
    %9 = vector.broadcast %cst_6 : f32 to vector<128x128xf32>
    %10 = arith.mulf %9, %7 : vector<128x128xf32>
    %11 = arith.mulf %10, %7 : vector<128x128xf32>
    %12 = arith.mulf %11, %7 : vector<128x128xf32>
    %13 = arith.addf %7, %12 : vector<128x128xf32>
    %cst_7 = arith.constant 0.797884583 : f32
    %14 = vector.broadcast %cst_7 : f32 to vector<128x128xf32>
    %15 = arith.mulf %14, %13 : vector<128x128xf32>
    %16 = math.tanh %15 : vector<128x128xf32>
    %cst_8 = arith.constant 5.000000e-01 : f32
    %17 = vector.broadcast %cst_8 : f32 to vector<128x128xf32>
    %18 = arith.mulf %17, %7 : vector<128x128xf32>
    %cst_9 = arith.constant 1.000000e+00 : f32
    %19 = vector.broadcast %cst_9 : f32 to vector<128x128xf32>
    %20 = arith.addf %19, %16 : vector<128x128xf32>
    %21 = arith.mulf %18, %20 : vector<128x128xf32>
    %cst_10 = arith.constant 1.341450e-01 : f32
    %22 = vector.broadcast %cst_10 : f32 to vector<128x128xf32>
    %23 = arith.mulf %22, %7 : vector<128x128xf32>
    %24 = arith.mulf %23, %7 : vector<128x128xf32>
    %cst_11 = arith.constant 1.000000e+00 : f32
    %25 = vector.broadcast %cst_11 : f32 to vector<128x128xf32>
    %26 = arith.addf %25, %24 : vector<128x128xf32>
    %cst_12 = arith.constant 0.797884583 : f32
    %27 = vector.broadcast %cst_12 : f32 to vector<128x128xf32>
    %28 = arith.mulf %27, %26 : vector<128x128xf32>
    %cst_13 = arith.constant 1.000000e+00 : f32
    %29 = vector.broadcast %cst_13 : f32 to vector<128x128xf32>
    %30 = arith.addf %29, %16 : vector<128x128xf32>
    %cst_14 = arith.constant 5.000000e-01 : f32
    %31 = vector.broadcast %cst_14 : f32 to vector<128x128xf32>
    %32 = arith.mulf %31, %30 : vector<128x128xf32>
    %cst_15 = arith.constant 5.000000e-01 : f32
    %33 = vector.broadcast %cst_15 : f32 to vector<128x128xf32>
    %34 = arith.mulf %33, %7 : vector<128x128xf32>
    %35 = arith.mulf %16, %16 : vector<128x128xf32>
    %cst_16 = arith.constant 1.000000e+00 : f32
    %36 = vector.broadcast %cst_16 : f32 to vector<128x128xf32>
    %37 = arith.subf %36, %35 : vector<128x128xf32>
    %38 = arith.mulf %34, %37 : vector<128x128xf32>
    %39 = arith.mulf %38, %28 : vector<128x128xf32>
    %40 = arith.addf %32, %39 : vector<128x128xf32>
    %41 = arith.mulf %40, %8 : vector<128x128xf32>
    %42 = vector.shape_cast %21 : vector<128x128xf32> to vector<8x16x128xf32>
    %cst_17 = arith.constant dense<0.000000e+00> : vector<8x128xf32>
    %43 = vector.multi_reduction <add>, %42, %cst_17 [1] : vector<8x16x128xf32> to vector<8x128xf32>
    %44 = vector.shape_cast %41 : vector<128x128xf32> to vector<8x16x128xf32>
    %cst_18 = arith.constant dense<0.000000e+00> : vector<8x128xf32>
    %45 = vector.multi_reduction <add>, %44, %cst_18 [1] : vector<8x16x128xf32> to vector<8x128xf32>
    %46 = tpu.concatenate %43, %45 in 1 : vector<8x128xf32>, vector<8x128xf32> -> vector<8x256xf32>
    %c0_19 = arith.constant 0 : index
    %c0_20 = arith.constant 0 : index
    %47 = vector.load %arg4[%c0_19, %c0_20] : memref<256x128xf32, #tpu.memory_space<vmem>>, vector<256x128xf32>
    %cst_21 = arith.constant dense<0.000000e+00> : vector<8x128xf32>
    %48 = tpu.matmul %46, %47, %cst_21 {dimension_numbers = #tpu.dot_dimension_numbers<[1], [0], [0], [1], [0, 0, 1, 1], [], []>} : vector<8x256xf32>, vector<256x128xf32>, vector<8x128xf32> -> vector<8x128xf32>
    %c0_22 = arith.constant 0 : index
    %c0_23 = arith.constant 0 : index
    %49 = vector.load %arg5[%c0_22, %c0_23] : memref<1x128xf32, #tpu.memory_space<vmem>>, vector<1x128xf32>
    %50 = vector.broadcast %49 : vector<1x128xf32> to vector<8x128xf32>
    %51 = arith.addf %48, %50 : vector<8x128xf32>
    %c0_24 = arith.constant 0 : index
    %c0_25 = arith.constant 0 : index
    %52 = vector.load %arg6[%c0_24, %c0_25] : memref<8x128xf32, #tpu.memory_space<vmem>>, vector<8x128xf32>
    tpu.vector_store %arg6[%c0_24, %c0_25], %51 {strides = array<i32>} : memref<8x128xf32, #tpu.memory_space<vmem>>, vector<8x128xf32>,
    return
  }
  func.func @transform_0(%arg0: i32) -> (i32, i32, i32) {
    %c0_i32 = arith.constant 0 : i32
    %c0_i32_0 = arith.constant 0 : i32
    %c0_i32_1 = arith.constant 0 : i32
    return %arg0, %c0_i32, %c0_i32_0 : i32, i32, i32
  }
  func.func @transform_1(%arg0: i32) -> (i32, i32) {
    %c0_i32 = arith.constant 0 : i32
    %c0_i32_0 = arith.constant 0 : i32
    %c0_i32_1 = arith.constant 0 : i32
    return %c0_i32, %c0_i32_0 : i32, i32
  }
  func.func @transform_2(%arg0: i32) -> (i32, i32) {
    %c0_i32 = arith.constant 0 : i32
    %c0_i32_0 = arith.constant 0 : i32
    %c0_i32_1 = arith.constant 0 : i32
    return %c0_i32, %c0_i32_0 : i32, i32
  }
  func.func @transform_3(%arg0: i32) -> (i32, i32) {
    %c0_i32 = arith.constant 0 : i32
    %c0_i32_0 = arith.constant 0 : i32
    %c0_i32_1 = arith.constant 0 : i32
    return %c0_i32, %c0_i32_0 : i32, i32
  }
  func.func @transform_4(%arg0: i32) -> (i32, i32) {
    %c0_i32 = arith.constant 0 : i32
    %c0_i32_0 = arith.constant 0 : i32
    %c0_i32_1 = arith.constant 0 : i32
    return %c0_i32, %c0_i32_0 : i32, i32
  }
  func.func @transform_5(%arg0: i32) -> (i32, i32) {
    %c0_i32 = arith.constant 0 : i32
    %c0_i32_0 = arith.constant 0 : i32
    return %arg0, %c0_i32 : i32, i32
  }
}

</mosaic_0001>

<bundles_post_ra>
// kernel: tpu_custom_call.1
= control target key start
LH: loop header
LB: loop body
LE: loop exit
PB: predicated region body
PF: predicated region fallthrough
CT: control target
= control target key end

     0   :  { %10 = vsyncpa [#allocation3], 0  ;;  %s2179_s0 = inlined_call_operand.hbm [shape: f32[16,16,64], index: 0, kind: input, shape index: {}]   ;;  %s2180_s1 = inlined_call_operand.hbm [shape: f32[64,256], index: 1, kind: input, shape index: {}]   ;;  %s2181_s2 = inlined_call_operand.vmem [shape: f32[1,256], index: 2, kind: input, shape index: {}]   ;;  %s2182_s3 = inlined_call_operand.hbm [shape: f32[256,128], index: 3, kind: input, shape index: {}]   ;;  %s2183_s4 = inlined_call_operand.vmem [shape: f32[1,128], index: 4, kind: input, shape index: {}]   ;;  %s2184_s5 = inlined_call_operand.hbm [shape: f32[16,128], index: 5, kind: output, shape index: {}]  }
   0x1   :  { %12 = vsyncpa [#allocation3 + $0x1], 0 }
   0x2   :  { %13 = vsyncpa [#allocation6], 0 }
   0x3   :  { %14 = vsyncpa [#allocation4], 0 }
   0x4   :  { %16 = vsyncpa [#allocation4 + $0x1], 0  ;;  %s1577_s18 = smov 0   ;;  %s1579_s19 = smov 0  }
   0x5   :  { %s1581_s20 = smov 0   ;;  %s1583_s21 = smov 0  }
   0x6 LB: > { %s1598_s22 = sadd.s32 4294967295, %s1536_s21   ;;  %s1212_s23 = sadd.s32 4294967294, %s1536_s21   ;;  %s1536_s21 = sphi %s1583_s21, %s2208_s21   ;;  %s1532_s20 = sphi %s1581_s20, %s2207_s20   ;;  %s1528_s19 = sphi %s1579_s19, %s2206_s19   ;;  %s1524_s18 = sphi %s1577_s18, %s2205_s18  }
   0x7   : > { %p42_p0 = scmp.ne.s32.totalorder %s1528_s19, %s1524_s18  ;;  %p2185_p1 = scmp.eq.s32.totalorder %s1598_s22, 0 }
   0x8   : > { %p156_p3 = scmp.eq.s32.totalorder %s1212_s23, 1  ;;  %p1213_p5 = scmp.ge.s32.totalorder %s1536_s21, 1 }
   0x9   : > { %p1607_p4 = por %p2185_p1, %p42_p0  ;;  %p163_p7 = scmp.lt.s32.totalorder %s1536_s21, 3 }
   0xa   : > { %p1612_p6 = por %p156_p3, %p42_p0  ;;  %s1538_s27 = smov [#allocation5]  }
   0xb   : > { %s2190_s24 = scalar_select %p1607_p4, 1, 0 }
   0xc   : > { %s2191_s25 = scalar_select %p1612_p6, 1, 0 }
   0xd   : > { %p1617_p8 = pnand %p1213_p5, %p163_p7  ;;  %s175_s28 = sshll.u32 %s1538_s27, 4  ;;  %s176_s28 = int_to_ptr.vmem [resolvable:$true] %s175_s28 }
   0xe   : > { %s1539_s30 = smov [#allocation7]   ;;  %s1399_s7 = scalar_lea.vmem %s176_s28, 2048 }
   0xf   : > { %s2192_s26 = scalar_select %p1617_p8, 1, 0 }
  0x10   : > { %p1296_p9 = pneg %p1617_p8  ;;  %s191_s6 = sshll.u32 %s1539_s30, 4  ;;  %s192_s6 = int_to_ptr.vmem [resolvable:$true] %s191_s6 }
  0x11   : > { %p1400_p13 = scmp.ne.s32.totalorder %s176_s28, %s1399_s7  ;;  %p1407_p5 = scmp.lt.s32.totalorder %s176_s28, %s176_s28 }
  0x12   : > { %p1626_p11 = pnand %p1296_p9, %p2185_p1  ;;  %p1408_p7 = scmp.lt.s32.totalorder %s1399_s7, %s1399_s7 }
  0x14   : > { %p1390_p12 = pneg %p1626_p11  ;;  %p1409_p10 = por %p1408_p7, %p1407_p5 }
  0x16   : > { %p1402_p0 = pnand %p1400_p13, %p1390_p12 }
  0x18   : > { %p1403_p3 = pneg %p1402_p0 }
  0x1a   : > { %p1410_p9 = pnand %p1409_p10, %p1403_p3 }
  0x1c   : > { %1413 = shalt.err (!%p1410_p9)
}
  0x1d   : > { %s1540_s8 = smov 256   ;;  %s1541_s9 = smov 16  }
  0x1e   : > { %1299 = dma.hbm_to_vmem [thread:$0]  (!%p1626_p11), %s2180_s1, 2048, %s176_s28, [#allocation6], %s1540_s8, %s1540_s8, %s1541_s9  }
  0x1f   : > { %s1425_s12 = scalar_lea.vmem %s192_s6, 4096  ;;  %p1433_p2 = scmp.lt.s32.totalorder %s192_s6, %s192_s6 }
  0x20   : > { %p1426_p1 = scmp.ne.s32.totalorder %s192_s6, %s1425_s12  ;;  %p1434_p6 = scmp.lt.s32.totalorder %s1425_s12, %s1425_s12 }
  0x22   : > { %p1428_p13 = pnand %p1426_p1, %p1390_p12  ;;  %p1435_p5 = por %p1434_p6, %p1433_p2 }
  0x24   : > { %p1429_p0 = pneg %p1428_p13 }
  0x26   : > { %p1436_p10 = pnand %p1435_p5, %p1429_p0 }
  0x28   : > { %1439 = shalt.err (!%p1436_p10)
}
  0x29   : > { %s2186_s13 = smov 128   ;;  %s1543_s14 = smov 8  }
  0x2a   : > { %1302 = dma.hbm_to_vmem [thread:$0]  (!%p1626_p11), %s2182_s3, 4096, %s192_s6, [#allocation6], %s2186_s13, %s2186_s13, %s1543_s14  }
  0x2b   : > { %s1652_s17 = sadd.s32 1, %s1536_s21   ;;  %s29_s27 = sadd.s32 1, %s1532_s20 }
  0x2c   : > { %s26_s23 = ssub.s32 %s1536_s21, %s1652_s17  ;;  %p36_p2 = scmp.ne.s32.totalorder %s1532_s20, %s1528_s19 }
  0x2d   : > { %p27_p1 = scmp.eq.s32.totalorder %s26_s23, 0  ;;  %p37_p6 = scmp.eq.s32.totalorder %s1536_s21, 0 }
  0x2e   : > { %p2194_p3 = scmp.eq.s32.totalorder %s1598_s22, 1  ;;  %p1313_p9 = scmp.lt.s32.totalorder %s1536_s21, 2 }
  0x2f   : > { %s1661_s28 = scalar_select %p27_p1, %s1532_s20, %s29_s27  }
  0x30   : > { %p38_p12 = por %p37_p6, %p36_p2  ;;  %p1665_p7 = por %p2194_p3, %p36_p2 }
  0x31   : > { %s208_s30 = sand.u32 1, %s1532_s20   ;;  %s1248_s6 = sshll.u32 %s1536_s21, 11 }
  0x32   : > { %s2195_s29 = scalar_select %p1665_p7, 1, 0 }
  0x33   : > { %s1217_s7 = sshll.u32 %s208_s30, 7  ;;  %s1675_s10 = scalar_lea.hbm %s2179_s0, %s1248_s6 }
  0x34   : > { %s212_s11 = scalar_lea.vmem [#allocation2], %s1217_s7  ;;  %p1679_p11 = pnand %p1313_p9, %p38_p12 }
  0x35   : > { %s220_s12 = sshll.u32 %s212_s11, 4  ;;  %s1683_s16 = scalar_lea.sflag [#allocation3], %s208_s30  ;;  %s1677_s12 = int_to_ptr.vmem [resolvable:$true] %s220_s12 }
  0x36   : > { %s1440_s23 = scalar_lea.hbm %s1675_s10, 2048  ;;  %p1442_p0 = pneg %p1679_p11 }
  0x37   : > { %p1441_p13 = scmp.ne.s32.totalorder %s1675_s10, %s1440_s23  ;;  %s1445_s7 = scalar_lea.hbm %s2179_s0, 4096 }
  0x38   : > { %p1446_p1 = scmp.lt.s32.totalorder %s1675_s10, %s2179_s0  ;;  %p1447_p2 = scmp.lt.s32.totalorder %s1445_s7, %s1440_s23 }
  0x39   : > { %p1443_p5 = pnand %p1442_p0, %p1441_p13 }
  0x3a   : > { %p1448_p6 = por %p1447_p2, %p1446_p1 }
  0x3b   : > { %p1444_p10 = pneg %p1443_p5 }
  0x3d   : > { %p1449_p12 = pnand %p1448_p6, %p1444_p10 }
  0x3f   : > { %1452 = shalt.err (!%p1449_p12)
}
  0x40   : > { %s1453_s30 = scalar_lea.vmem %s1677_s12, 2048  ;;  %s1544_s11 = smov [#allocation2]  }
  0x41   : > { %p1454_p3 = scmp.ne.s32.totalorder %s1677_s12, %s1453_s30  ;;  %s1458_s13 = sshll.u32 %s1544_s11, 4  ;;  %s1459_s13 = int_to_ptr.vmem [resolvable:$false] %s1458_s13 }
  0x42   : > { %s1460_s27 = scalar_lea.vmem %s1459_s13, 4096  ;;  %p1461_p5 = scmp.lt.s32.totalorder %s1677_s12, %s1459_s13 }
  0x43   : > { %p1456_p9 = pnand %p1454_p3, %p1442_p0  ;;  %p1462_p7 = scmp.lt.s32.totalorder %s1460_s27, %s1453_s30 }
  0x45   : > { %p1457_p13 = pneg %p1456_p9  ;;  %p1463_p4 = por %p1462_p7, %p1461_p5 }
  0x47   : > { %p1464_p8 = pnand %p1463_p4, %p1457_p13 }
  0x49   : > { %1467 = shalt.err (!%p1464_p8)
}
  0x4a   : > { %s2197_s23 = smov 128   ;;  %p2198_p0 = scmp.ne.s32.totalorder %s2192_s26, 0 }
  0x4b   : > { %1306 = dma.hbm_to_vmem [thread:$0]  (!%p1679_p11), %s1675_s10, 2048, %s1677_s12, %s1683_s16, %s2197_s23, %s2197_s23, %s1543_s14  }
  0x4c   : > { %232 = sbr.rel (%p2198_p0) target bundleno = 644 (0x284), region = 40  ;;  %s1710_s6 = sand.u32 (!%p2198_p0), 1, %s1528_s19  }
  0x4d   : > { %s1222_s13 = sshll.u32 (!%p2198_p0), %s1710_s6, 7  ;;  %s235_s7 = scalar_lea.sflag (!%p2198_p0), [#allocation3], %s1710_s6 }
  0x4e   : > { %s1714_s8 = scalar_lea.vmem (!%p2198_p0), [#allocation2], %s1222_s13  ;;  %p2199_p4 = scmp.ne.s32.totalorder (!%p2198_p0), %s2190_s24, 0 }
  0x51   : > { %1511 = dma.done.wait (%p2199_p4), %s235_s7, 2048  }
  0x52   : > { %1513 = vsyncadd (%p2199_p4), %s235_s7, 4294965248  ;;  %p2200_p8 = scmp.eq.s32.totalorder %s1598_s22, 0 }
  0x54   : > { %1515 = dma.done.wait (%p2200_p8), [#allocation6], 6144   ;;  %p2201_p7 = pmov %p2200_p8 }
  0x55   : > { %v1545_v0 = vmov 0.0   ;;  %v305_v1 = vld [vmem:[#allocation5 + $0x78] sm:$0xff]  ;;  %v304_v2 = vld [vmem:[#allocation5 + $0x70] sm:$0xff]  ;;  %v303_v3 = vld [vmem:[#allocation5 + $0x68] sm:$0xff]  ;;  %vm318_vm0 = vcmask 523264   ;;  %v308_v33 = vlaneseq  ;;  %vm968_vm1 = vcmask 1041409  }
  0x56   : > { %1517 = vsyncadd (%p2201_p7), [#allocation6], 4294961152  ;;  %431 = vmatprep.mubr.f32.mxu0 %v1545_v0  ;;  %383 = vmatprep.subr.mxu0 %v305_v1  ;;  %v302_v4 = vld [vmem:[#allocation5 + $0x60] sm:$0xff]  ;;  %v301_v5 = vld [vmem:[#allocation5 + $0x58] sm:$0xff]  ;;  %vm970_vm2 = vcmask 1042434   ;;  %vm972_vm3 = vcmask 1043459  }
  0x57   : > { %384 = vmatpush1.msra.mxu0 %v304_v2  ;;  %v300_v6 = vld [vmem:[#allocation5 + $0x50] sm:$0xff]  ;;  %v299_v7 = vld [vmem:[#allocation5 + $0x48] sm:$0xff]  ;;  %v298_v8 = vld [vmem:[#allocation5 + $0x40] sm:$0xff]  ;;  %v1772_v37 = vshrl.u32 %v308_v33, 7  ;;  %vm974_vm4 = vcmask 1044484   ;;  %vm976_vm5 = vcmask 1045509  }
  0x58   : > { %385 = vmatprep.subr.mxu0 %v303_v3  ;;  %v297_v9 = vld [vmem:[#allocation5 + $0x38] sm:$0xff]  ;;  %v296_v10 = vld [vmem:[#allocation5 + $0x30] sm:$0xff]  ;;  %v295_v11 = vld [vmem:[#allocation5 + $0x28] sm:$0xff]  ;;  %vm978_vm6 = vcmask 1046534   ;;  %vm980_vm7 = vcmask 1047559   ;;  %s1225_s14 = sshll.u32 %s1710_s6, 3 }
  0x59   : > { %386 = vmatpush1.msra.mxu0 %v302_v4  ;;  %v294_v12 = vld [vmem:[#allocation5 + $0x20] sm:$0xff]  ;;  %v293_v13 = vld [vmem:[#allocation5 + $0x18] sm:$0xff]  ;;  %v292_v14 = vld [vmem:[#allocation5 + $0x10] sm:$0xff]  ;;  %v310_v42 = vsub.s32 0, %v1772_v37  ;;  %s1244_s15 = sshll.u32 %s1598_s22, 7  ;;  %s272_s16 = scalar_lea.vmem [#allocation8], %s1225_s14 }
  0x5a   : > { %387 = vmatprep.subr.mxu0 %v301_v5  ;;  %v291_v15 = vld [vmem:[#allocation5 + $0x8] sm:$0xff]  ;;  %v290_v16 = vld [vmem:[#allocation5] sm:$0xff]  ;;  %v276_v19 = vld [vmem:[%s1714_s8 + $0x10] sm:$0xff]  ;;  %s1123_s9 = sshll.u32 %s272_s16, 4  ;;  %s1121_s27 = scalar_lea.hbm %s2184_s5, %s1244_s15  ;;  %s1124_s9 = int_to_ptr.vmem [resolvable:$true] %s1123_s9 }
  0x5b   : > { %388 = vmatpush1.msra.mxu0 %v300_v6  ;;  %v274_v17 = vld [vmem:[%s1714_s8] sm:$0xff]  ;;  %v275_v18 = vld [vmem:[%s1714_s8 + $0x8] sm:$0xff]  ;;  %v277_v20 = vld [vmem:[%s1714_s8 + $0x18] sm:$0xff]  ;;  %s1110_s23 = scalar_lea.sflag [#allocation4], %s1710_s6  ;;  %s1468_s13 = scalar_lea.vmem %s1124_s9, 128 }
  0x5c   : > { %389 = vmatprep.subr.mxu0 %v299_v7  ;;  %v278_v21 = vld [vmem:[%s1714_s8 + $0x20] sm:$0xff]  ;;  %v279_v22 = vld [vmem:[%s1714_s8 + $0x28] sm:$0xff]  ;;  %v280_v23 = vld [vmem:[%s1714_s8 + $0x30] sm:$0xff]  ;;  %p1469_p11 = scmp.ne.s32.totalorder %s1124_s9, %s1468_s13  ;;  %p2202_p10 = scmp.ne.s32.totalorder %s2195_s29, 0 }
  0x5d   : > { %390 = vmatpush1.msra.mxu0 %v298_v8  ;;  %v281_v24 = vld [vmem:[%s1714_s8 + $0x38] sm:$0xff]  ;;  %v282_v25 = vld [vmem:[%s1714_s8 + $0x40] sm:$0xff]  ;;  %v283_v26 = vld [vmem:[%s1714_s8 + $0x48] sm:$0xff]  ;;  %s1546_s7 = smov [#allocation8]  }
  0x5e   : > { %391 = vmatprep.subr.mxu0 %v297_v9  ;;  %v284_v27 = vld [vmem:[%s1714_s8 + $0x50] sm:$0xff]  ;;  %v285_v28 = vld [vmem:[%s1714_s8 + $0x58] sm:$0xff]  ;;  %v286_v29 = vld [vmem:[%s1714_s8 + $0x60] sm:$0xff]  ;;  %p1470_p1 = pnand %p1469_p11, %p2202_p10 }
  0x5f   : > { %392 = vmatpush1.msra.mxu0 %v296_v10  ;;  %v287_v30 = vld [vmem:[%s1714_s8 + $0x68] sm:$0xff]  ;;  %v288_v31 = vld [vmem:[%s1714_s8 + $0x70] sm:$0xff]  ;;  %v289_v32 = vld [vmem:[%s1714_s8 + $0x78] sm:$0xff]  ;;  %s1472_s8 = sshll.u32 %s1546_s7, 4  ;;  %s1473_s8 = int_to_ptr.vmem [resolvable:$false] %s1472_s8 }
  0x60   : > { %393 = vmatprep.subr.mxu0 %v295_v11  ;;  %v1030_v34 = vld [vmem:[#allocation7 + $0xf8] sm:$0xff]  ;;  %v1029_v36 = vld [vmem:[#allocation7 + $0xf0] sm:$0xff]  ;;  %v1028_v39 = vld [vmem:[#allocation7 + $0xe8] sm:$0xff]  ;;  %p1471_p2 = pneg %p1470_p1  ;;  %s1474_s22 = scalar_lea.vmem %s1473_s8, 256 }
  0x61   : > { %394 = vmatpush1.msra.mxu0 %v294_v12  ;;  %1249 = vmatprep.subr.mxu1 %v1030_v34  ;;  %v1014_v35 = vld [vmem:[#allocation7 + $0x78] sm:$0xff]  ;;  %v1013_v38 = vld [vmem:[#allocation7 + $0x70] sm:$0xff]  ;;  %v1012_v40 = vld [vmem:[#allocation7 + $0x68] sm:$0xff]  ;;  %p1475_p6 = scmp.lt.s32.totalorder %s1124_s9, %s1473_s8  ;;  %p1476_p12 = scmp.lt.s32.totalorder %s1474_s22, %s1468_s13 }
  0x62   : > { %395 = vmatprep.subr.mxu0 %v293_v13  ;;  %1250 = vmatpush3.msra.mxu1 %v1014_v35  ;;  %v1027_v41 = vld [vmem:[#allocation7 + $0xe0] sm:$0xff]  ;;  %v1026_v45 = vld [vmem:[#allocation7 + $0xd8] sm:$0xff]  ;;  %v1025_v47 = vld [vmem:[#allocation7 + $0xd0] sm:$0xff] }
  0x63   : > { %396 = vmatpush1.msra.mxu0 %v292_v14  ;;  %1251 = vmatprep.subr.mxu1 %v1029_v36  ;;  %v1011_v43 = vld [vmem:[#allocation7 + $0x60] sm:$0xff]  ;;  %v1010_v46 = vld [vmem:[#allocation7 + $0x58] sm:$0xff]  ;;  %v1009_v49 = vld [vmem:[#allocation7 + $0x50] sm:$0xff]  ;;  %p1477_p3 = por %p1476_p12, %p1475_p6 }
  0x64   : > { %397 = vmatprep.subr.mxu0 %v291_v15  ;;  %1252 = vmatpush3.msra.mxu1 %v1013_v38  ;;  %v1778_v44 = vld [vmem:[%s2181_s2] sm:$0x3]  ;;  %v1024_v50 = vld [vmem:[#allocation7 + $0xc8] sm:$0xff]  ;;  %v1022_v57 = vld [vmem:[#allocation7 + $0xb8] sm:$0xff] }
  0x65   : > { %398 = vmatpush1.msra.mxu0 %v290_v16  ;;  %1253 = vmatprep.subr.mxu1 %v1028_v39  ;;  %v1781_v48 = vrot.slane %v1778_v44, %v310_v42  ;;  %v1008_v51 = vld [vmem:[#allocation7 + $0x48] sm:$0xff]  ;;  %v1023_v53 = vld [vmem:[#allocation7 + $0xc0] sm:$0xff]  ;;  %v1006_v59 = vld [vmem:[#allocation7 + $0x38] sm:$0xff]  ;;  %p1478_p9 = pnand %p1477_p3, %p1471_p2 }
  0x66   : > { %1226 = vmatmul.mubr.msk.f32.vlgmr.msra.gmra.mxu0 %vm318_vm0, %v274_v17  ;;  %1254 = vmatpush3.msra.mxu1 %v1012_v40  ;;  %v1007_v55 = vld [vmem:[#allocation7 + $0x40] sm:$0xff]  ;;  %v1021_v61 = vld [vmem:[#allocation7 + $0xb0] sm:$0xff]  ;;  %v1020_v63 = vld [vmem:[#allocation7 + $0xa8] sm:$0xff] }
  0x67   : > { %437 = vmatprep.mubr.f32.mxu0 %v1545_v0  ;;  %1255 = vmatprep.subr.mxu1 %v1027_v41  ;;  %v1005_v62 = vld [vmem:[#allocation7 + $0x30] sm:$0xff]  ;;  %v1004_v2 = vld [vmem:[#allocation7 + $0x28] sm:$0xff]  ;;  %v1019_v4 = vld [vmem:[#allocation7 + $0xa0] sm:$0xff] }
  0x68   : > { %1256 = vmatpush3.msra.mxu1 %v1011_v43  ;;  %v1003_v7 = vld [vmem:[#allocation7 + $0x20] sm:$0xff]  ;;  %v1018_v9 = vld [vmem:[#allocation7 + $0x98] sm:$0xff]  ;;  %v1017_v15 = vld [vmem:[#allocation7 + $0x90] sm:$0xff] }
  0x69   : > { %1257 = vmatprep.subr.mxu1 %v1026_v45  ;;  %v1002_v13 = vld [vmem:[#allocation7 + $0x18] sm:$0xff] }
  0x6a   : > { %1227 = vmatmul.mubr.msk.f32.gmra.mxu0 %vm318_vm0, %v275_v18  ;;  %1258 = vmatpush3.msra.mxu1 %v1010_v46 }
  0x6b   : > { %443 = vmatprep.mubr.f32.mxu0 %v1545_v0  ;;  %1259 = vmatprep.subr.mxu1 %v1025_v47 }
  0x6c   : > { %1260 = vmatpush3.msra.mxu1 %v1009_v49 }
  0x6d   : > { %1261 = vmatprep.subr.mxu1 %v1024_v50 }
  0x6e   : > { %1228 = vmatmul.mubr.msk.f32.gmra.mxu0 %vm318_vm0, %v276_v19  ;;  %1262 = vmatpush3.msra.mxu1 %v1008_v51  ;;  %v1001_v19 = vld [vmem:[#allocation7 + $0x10] sm:$0xff] }
  0x6f   : > { %449 = vmatprep.mubr.f32.mxu0 %v1545_v0  ;;  %1263 = vmatprep.subr.mxu1 %v1023_v53 }
  0x70   : > { %1264 = vmatpush3.msra.mxu1 %v1007_v55  ;;  %v314_v55 = vsub.s32 1, %v1772_v37 }
  0x71   : > { %1265 = vmatprep.subr.mxu1 %v1022_v57 }
  0x72   : > { %1229 = vmatmul.mubr.msk.f32.gmra.mxu0 %vm318_vm0, %v277_v20  ;;  %1266 = vmatpush3.msra.mxu1 %v1006_v59  ;;  %v1847_v37 = vrot.slane %v1778_v44, %v314_v55 }
  0x73   : > { %455 = vmatprep.mubr.f32.mxu0 %v1545_v0  ;;  %1267 = vmatprep.subr.mxu1 %v1021_v61 }
  0x74   : > { %1268 = vmatpush3.msra.mxu1 %v1005_v62 }
  0x75   : > { %1269 = vmatprep.subr.mxu1 %v1020_v63 }
  0x76   : > { %1230 = vmatmul.mubr.msk.f32.gmra.mxu0 %vm318_vm0, %v278_v21  ;;  %1270 = vmatpush3.msra.mxu1 %v1004_v2  ;;  %v1016_v21 = vld [vmem:[#allocation7 + $0x88] sm:$0xff] }
  0x77   : > { %461 = vmatprep.mubr.f32.mxu0 %v1545_v0  ;;  %1271 = vmatprep.subr.mxu1 %v1019_v4 }
  0x78   : > { %1272 = vmatpush3.msra.mxu1 %v1003_v7 }
  0x79   : > { %1273 = vmatprep.subr.mxu1 %v1018_v9 }
  0x7a   : > { %1231 = vmatmul.mubr.msk.f32.gmra.mxu0 %vm318_vm0, %v279_v22  ;;  %1274 = vmatpush3.msra.mxu1 %v1002_v13 }
  0x7b   : > { %467 = vmatprep.mubr.f32.mxu0 %v1545_v0  ;;  %1275 = vmatprep.subr.mxu1 %v1017_v15 }
  0x7c   : > { %1276 = vmatpush3.msra.mxu1 %v1001_v19 }
  0x7d   : > { %1277 = vmatprep.subr.mxu1 %v1016_v21 }
  0x7e   : > { %1232 = vmatmul.mubr.msk.f32.gmra.mxu0 %vm318_vm0, %v280_v23 }
  0x7f   : > { %473 = vmatprep.mubr.f32.mxu0 %v1545_v0 }
  0x82   : > { %1233 = vmatmul.mubr.msk.f32.gmra.mxu0 %vm318_vm0, %v281_v24 }
  0x83   : > { %479 = vmatprep.mubr.f32.mxu0 %v1545_v0 }
  0x86   : > { %1234 = vmatmul.mubr.msk.f32.gmra.mxu0 %vm318_vm0, %v282_v25  ;;  %v1000_v25 = vld [vmem:[#allocation7 + $0x8] sm:$0xff] }
  0x87   : > { %485 = vmatprep.mubr.f32.mxu0 %v1545_v0  ;;  %1278 = vmatpush3.msra.mxu1 %v1000_v25 }
  0x8a   : > { %1235 = vmatmul.mubr.msk.f32.gmra.mxu0 %vm318_vm0, %v283_v26 }
  0x8b   : > { %491 = vmatprep.mubr.f32.mxu0 %v1545_v0 }
  0x8e   : > { %1236 = vmatmul.mubr.msk.f32.gmra.mxu0 %vm318_vm0, %v284_v27  ;;  %v1015_v27 = vld [vmem:[#allocation7 + $0x80] sm:$0xff] }
  0x8f   : > { %497 = vmatprep.mubr.f32.mxu0 %v1545_v0  ;;  %1279 = vmatprep.subr.mxu1 %v1015_v27 }
  0x92   : > { %1237 = vmatmul.mubr.msk.f32.gmra.mxu0 %vm318_vm0, %v285_v28 }
  0x93   : > { %503 = vmatprep.mubr.f32.mxu0 %v1545_v0 }
  0x96   : > { %1238 = vmatmul.mubr.msk.f32.gmra.mxu0 %vm318_vm0, %v286_v29 }
  0x97   : > { %509 = vmatprep.mubr.f32.mxu0 %v1545_v0 }
  0x9a   : > { %1239 = vmatmul.mubr.msk.f32.gmra.mxu0 %vm318_vm0, %v287_v30 }
  0x9b   : > { %515 = vmatprep.mubr.f32.mxu0 %v1545_v0 }
  0x9e   : > { %1240 = vmatmul.mubr.msk.f32.gmra.mxu0 %vm318_vm0, %v288_v31  ;;  %v999_v31 = vld [vmem:[#allocation7] sm:$0xff] }
  0x9f   : > { %521 = vmatprep.mubr.f32.mxu0 %v1545_v0  ;;  %1280 = vmatpush3.msra.mxu1 %v999_v31 }
  0xa2   : > { %1241 = vmatmul.mubr.msk.f32.gmra.mxu0 %vm318_vm0, %v289_v32 }
 0x126   : > { %v433_v52 = vpop.f32.mrf.mxu0 }
 0x127   : > { %v1784_v54 = vadd.f32 %v433_v52, %v1781_v48 }
 0x128   : > { %v1786_v56 = vpop.f32.mrf.mxu0 }
 0x129   : > { %v528_v58 = vmul.f32 0.044715, %v1784_v54  ;;  %v672_v32 = vmul.f32 0.134145, %v1784_v54  ;;  %v1852_v9 = vmul.f32 0.5, %v1784_v54 }
 0x12a   : > { %v439_v60 = vpop.f32.mrf.mxu0 }
 0x12b   : > { %v544_v0 = vmul.f32 %v528_v58, %v1784_v54  ;;  %v1791_v1 = vadd.f32 %v439_v60, %v1781_v48  ;;  %v688_v42 = vmul.f32 %v672_v32, %v1784_v54 }
 0x12c   : > { %v1793_v3 = vpop.f32.mrf.mxu0 }
 0x12d   : > { %v560_v5 = vmul.f32 %v544_v0, %v1784_v54  ;;  %v529_v6 = vmul.f32 0.044715, %v1791_v1  ;;  %v673_v49 = vmul.f32 0.134145, %v1791_v1  ;;  %v704_v57 = vadd.f32 1.0, %v688_v42 }
 0x12e   : > { %v445_v8 = vpop.f32.mrf.mxu0 }
 0x12f   : > { %v576_v10 = vadd.f32 %v560_v5, %v1784_v54  ;;  %v545_v11 = vmul.f32 %v529_v6, %v1791_v1  ;;  %v1800_v12 = vadd.f32 %v445_v8, %v1781_v48  ;;  %v689_v63 = vmul.f32 %v673_v49, %v1791_v1 }
 0x130   : > { %v1802_v14 = vpop.f32.mrf.mxu0 }
 0x131   : > { %v592_v16 = vmul.f32 0.7978846, %v576_v10  ;;  %v561_v17 = vmul.f32 %v545_v11, %v1791_v1  ;;  %v530_v18 = vmul.f32 0.044715, %v1800_v12  ;;  %v674_v6 = vmul.f32 0.134145, %v1800_v12 }
 0x132   : > { %v451_v20 = vpop.f32.mrf.mxu0  ;;  %v720_v10 = vmul.f32 0.7978846, %v704_v57  ;;  %v705_v15 = vadd.f32 1.0, %v689_v63 }
 0x133   : > { %1356 = vtanh.f32 %v592_v16  ;;  %v577_v22 = vadd.f32 %v561_v17, %v1791_v1  ;;  %v546_v23 = vmul.f32 %v530_v18, %v1800_v12  ;;  %v1809_v24 = vadd.f32 %v451_v20, %v1781_v48 }
 0x134   : > { %v1811_v26 = vpop.f32.mrf.mxu0 }
 0x135   : > { %v593_v28 = vmul.f32 0.7978846, %v577_v22  ;;  %v562_v29 = vmul.f32 %v546_v23, %v1800_v12  ;;  %v531_v30 = vmul.f32 0.044715, %v1809_v24  ;;  %v675_v16 = vmul.f32 0.134145, %v1809_v24 }
 0x136   : > { %v457_v33 = vpop.f32.mrf.mxu0  ;;  %v436_v22 = vadd.f32 %v1786_v56, %v1847_v37  ;;  %v690_v23 = vmul.f32 %v674_v6, %v1800_v12 }
 0x137   : > { %1358 = vtanh.f32 %v593_v28  ;;  %v578_v34 = vadd.f32 %v562_v29, %v1800_v12  ;;  %v547_v35 = vmul.f32 %v531_v30, %v1809_v24  ;;  %v1819_v36 = vadd.f32 %v457_v33, %v1781_v48 }
 0x138   : > { %v1821_v38 = vpop.f32.mrf.mxu0  ;;  %v1872_v30 = vmul.f32 0.5, %v1791_v1  ;;  %v691_v42 = vmul.f32 %v675_v16, %v1809_v24 }
 0x139   : > { %v594_v39 = vmul.f32 0.7978846, %v578_v34  ;;  %v563_v40 = vmul.f32 %v547_v35, %v1809_v24  ;;  %v532_v41 = vmul.f32 0.044715, %v1819_v36  ;;  %v721_v34 = vmul.f32 0.7978846, %v705_v15 }
 0x13a   : > { %v463_v43 = vpop.f32.mrf.mxu0  ;;  %v676_v1 = vmul.f32 0.134145, %v1819_v36 }
 0x13b   : > { %1360 = vtanh.f32 %v594_v39  ;;  %v579_v45 = vadd.f32 %v563_v40, %v1809_v24  ;;  %v548_v46 = vmul.f32 %v532_v41, %v1819_v36  ;;  %v1829_v47 = vadd.f32 %v463_v43, %v1781_v48 }
 0x13c   : > { %v1832_v50 = vpop.f32.mrf.mxu0  ;;  %v706_v43 = vadd.f32 1.0, %v690_v23 }
 0x13d   : > { %v595_v51 = vmul.f32 0.7978846, %v579_v45  ;;  %v564_v52 = vmul.f32 %v548_v46, %v1819_v36  ;;  %v533_v53 = vmul.f32 0.044715, %v1829_v47  ;;  %v677_v15 = vmul.f32 0.134145, %v1829_v47 }
 0x13e   : > { %v469_v58 = vpop.f32.mrf.mxu0 }
 0x13f   : > { %1362 = vtanh.f32 %v595_v51  ;;  %v580_v59 = vadd.f32 %v564_v52, %v1819_v36  ;;  %v549_v60 = vmul.f32 %v533_v53, %v1829_v47  ;;  %v1840_v61 = vadd.f32 %v469_v58, %v1781_v48 }
 0x140   : > { %v1357_v62 = vpop.eup %1356  ;;  %v1843_v0 = vpop.f32.mrf.mxu0  ;;  %v442_v53 = vadd.f32 %v1793_v3, %v1847_v37  ;;  %v722_v3 = vmul.f32 0.7978846, %v706_v43  ;;  %v448_v43 = vadd.f32 %v1802_v14, %v1847_v37 }
 0x141   : > { %v752_v2 = vmul.f32 %v1357_v62, %v1357_v62  ;;  %v596_v4 = vmul.f32 0.7978846, %v580_v59  ;;  %v565_v5 = vmul.f32 %v549_v60, %v1829_v47  ;;  %v534_v7 = vmul.f32 0.044715, %v1840_v61 }
 0x142   : > { %v475_v8 = vpop.f32.mrf.mxu0  ;;  %v1859_v19 = vadd.f32 1.0, %v1357_v62  ;;  %v1891_v59 = vmul.f32 0.5, %v1800_v12 }
 0x143   : > { %v768_v11 = vsub.f32 1.0, %v752_v2  ;;  %1364 = vtanh.f32 %v596_v4  ;;  %v581_v17 = vadd.f32 %v565_v5, %v1829_v47  ;;  %v550_v44 = vmul.f32 %v534_v7, %v1840_v61 }
 0x144   : > { %v1359_v13 = vpop.eup %1358  ;;  %v1857_v18 = vpop.f32.mrf.mxu0  ;;  %v1863_v54 = vadd.f32 %v475_v8, %v1781_v48  ;;  %v736_v40 = vmul.f32 0.5, %v1859_v19  ;;  %v707_v2 = vadd.f32 1.0, %v691_v42  ;;  %v692_v5 = vmul.f32 %v676_v1, %v1819_v36 }
 0x145   : > { %v784_v20 = vmul.f32 %v768_v11, %v1852_v9  ;;  %v753_v21 = vmul.f32 %v1359_v13, %v1359_v13  ;;  %v597_v25 = vmul.f32 0.7978846, %v581_v17  ;;  %v566_v27 = vmul.f32 %v550_v44, %v1840_v61 }
 0x146   : > { %v1869_v28 = vpop.f32.mrf.mxu0  ;;  %v1874_v31 = vadd.f32 1.0, %v1359_v13  ;;  %v535_v56 = vmul.f32 0.044715, %v1863_v54  ;;  %v627_v13 = vmul.f32 0.5, %v1809_v24  ;;  %v1909_v24 = vmul.f32 0.5, %v1819_v36 }
 0x147   : > { %v800_v29 = vmul.f32 %v784_v20, %v720_v10  ;;  %v769_v32 = vsub.f32 1.0, %v753_v21  ;;  %1366 = vtanh.f32 %v597_v25  ;;  %v582_v35 = vadd.f32 %v566_v27, %v1840_v61 }
 0x148   : > { %v1361_v33 = vpop.eup %1360  ;;  %v1878_v39 = vpop.f32.mrf.mxu0  ;;  %v551_v49 = vmul.f32 %v535_v56, %v1863_v54  ;;  %v737_v55 = vmul.f32 0.5, %v1874_v31  ;;  %v723_v25 = vmul.f32 0.7978846, %v707_v2  ;;  %v708_v27 = vadd.f32 1.0, %v692_v5 }
 0x149   : > { %v785_v41 = vmul.f32 %v769_v32, %v1872_v30  ;;  %v754_v45 = vmul.f32 %v1361_v33, %v1361_v33  ;;  %v598_v46 = vmul.f32 0.7978846, %v582_v35  ;;  %v816_v52 = vadd.f32 %v800_v29, %v736_v40 }
 0x14a   : > { %v1885_v51 = vpop.f32.mrf.mxu0  ;;  %v567_v62 = vmul.f32 %v551_v49, %v1863_v54  ;;  %v1897_v7 = vadd.f32 1.0, %v1361_v33  ;;  %v678_v35 = vmul.f32 0.134145, %v1840_v61 }
 0x14b   : > { %v801_v57 = vmul.f32 %v785_v41, %v721_v34  ;;  %v770_v60 = vsub.f32 1.0, %v754_v45  ;;  %1368 = vtanh.f32 %v598_v46  ;;  %v832_v12 = vmul.f32 %v816_v52, %v436_v22 }
 0x14c   : > { %v1363_v58 = vpop.eup %1362  ;;  %v1895_v6 = vpop.f32.mrf.mxu0  ;;  %v583_v10 = vadd.f32 %v567_v62, %v1863_v54  ;;  %v738_v32 = vmul.f32 0.5, %v1897_v7  ;;  %v693_v34 = vmul.f32 %v677_v15, %v1829_v47  ;;  %v454_v45 = vadd.f32 %v1811_v26, %v1847_v37 }
 0x14d   : > { %v817_v63 = vadd.f32 %v801_v57, %v737_v55  ;;  %v755_v4 = vmul.f32 %v1363_v58, %v1363_v58  ;;  %v786_v8 = vmul.f32 %v770_v60, %v1891_v59  ;;  %v643_v44 = vadd.f32 1.0, %v1363_v58 }
 0x14e   : > { %v599_v21 = vmul.f32 0.7978846, %v583_v10  ;;  %v1905_v29 = vpop.f32.mrf.mxu0  ;;  %v724_v46 = vmul.f32 0.7978846, %v708_v27  ;;  %v709_v57 = vadd.f32 1.0, %v693_v34  ;;  %v694_v58 = vmul.f32 %v678_v35, %v1840_v61 }
 0x14f   : > { %v833_v11 = vmul.f32 %v817_v63, %v442_v53  ;;  %v802_v17 = vmul.f32 %v786_v8, %v722_v3  ;;  %v771_v20 = vsub.f32 1.0, %v755_v4  ;;  %v739_v40 = vmul.f32 0.5, %v643_v44 }
 0x150   : > { %v1365_v16 = vpop.eup %1364  ;;  %1370 = vtanh.f32 %v599_v21  ;;  %v1917_v49 = vpop.f32.mrf.mxu0  ;;  %v1925_v60 = vadd.f32 %v1869_v28, %v1781_v48  ;;  %v679_v26 = vmul.f32 0.134145, %v1863_v54  ;;  %v629_v4 = vmul.f32 0.5, %v1829_v47 }
 0x151   : > { %v1903_v23 = vadd.f32 %v833_v11, %v832_v12  ;;  %v787_v33 = vmul.f32 %v771_v20, %v627_v13  ;;  %v756_v22 = vmul.f32 %v1365_v16, %v1365_v16  ;;  %v818_v56 = vadd.f32 %v802_v17, %v738_v32 }
 0x152   : > { %v1919_v52 = vadd.f32 1.0, %v1365_v16  ;;  %v1929_v8 = vpop.f32.mrf.mxu0  ;;  %v657_v10 = vmul.f32 %v1874_v31, %v1872_v30  ;;  %v536_v28 = vmul.f32 0.044715, %v1925_v60  ;;  %v725_v15 = vmul.f32 0.7978846, %v709_v57 }
 0x153   : > { %v803_v41 = vmul.f32 %v787_v33, %v723_v25  ;;  %v772_v42 = vsub.f32 1.0, %v756_v22  ;;  %v834_v14 = vmul.f32 %v818_v56, %v448_v43  ;;  %v710_v17 = vadd.f32 1.0, %v694_v58 }
 0x154   : > { %v1367_v1 = vpop.eup %1366  ;;  %v740_v11 = vmul.f32 0.5, %v1919_v52  ;;  %v656_v21 = vmul.f32 %v1859_v19, %v1852_v9  ;;  %v695_v25 = vmul.f32 %v679_v26, %v1863_v54  ;;  %v460_v27 = vadd.f32 %v1821_v38, %v1847_v37  ;;  %v1940_v31 = vpop.f32.mrf.mxu0 }
 0x155   : > { %v819_v36 = vadd.f32 %v803_v41, %v739_v40  ;;  %v788_v53 = vmul.f32 %v772_v42, %v1909_v24  ;;  %v757_v55 = vmul.f32 %v1367_v1, %v1367_v1  ;;  %v645_v5 = vadd.f32 1.0, %v1367_v1 }
 0x156   : > { %v848_v33 = vadd.f32 %v657_v10, %v656_v21  ;;  %v659_v22 = vmul.f32 %v643_v44, %v627_v13  ;;  %v552_v35 = vmul.f32 %v536_v28, %v1925_v60  ;;  %v466_v40 = vadd.f32 %v1832_v50, %v1847_v37 }
 0x157   : > { %v835_v62 = vmul.f32 %v819_v36, %v454_v45  ;;  %v804_v63 = vmul.f32 %v788_v53, %v724_v46  ;;  %v773_v3 = vsub.f32 1.0, %v757_v55  ;;  %v741_v32 = vmul.f32 0.5, %v645_v5  ;;  %v1953_v36 = vpop.f32.mrf.mxu0 }
 0x158   : > { %v1369_v2 = vpop.eup %1368  ;;  %v1946_v19 = vmul.f32 0.5, %v1840_v61  ;;  %v726_v41 = vmul.f32 0.7978846, %v710_v17  ;;  %v905_v38 = vrot.slane %v1903_v23, 4  ;;  %v658_v42 = vmul.f32 %v1897_v7, %v1891_v59 }
 0x159   : > { %v911_v12 = vadd.f32 %v835_v62, %v834_v14  ;;  %v789_v16 = vmul.f32 %v773_v3, %v629_v4  ;;  %v758_v20 = vmul.f32 %v1369_v2, %v1369_v2  ;;  %v820_v47 = vadd.f32 %v804_v63, %v740_v11 }
 0x15a   : > { %v711_v43 = vadd.f32 1.0, %v695_v25  ;;  %v568_v46 = vmul.f32 %v552_v35, %v1925_v60  ;;  %v849_v50 = vrot.slane %v848_v33, 4  ;;  %v855_v53 = vadd.f32 %v659_v22, %v658_v42 }
 0x15b   : > { %v805_v30 = vmul.f32 %v789_v16, %v725_v15  ;;  %v774_v34 = vsub.f32 1.0, %v758_v20  ;;  %v836_v1 = vmul.f32 %v820_v47, %v460_v27  ;;  %v912_v61 = vrot.slane %v911_v12, 4  ;;  %v1962_v15 = vpop.f32.mrf.mxu0 }
 0x15c   : > { %v631_v55 = vmul.f32 0.5, %v1863_v54  ;;  %v646_v58 = vadd.f32 1.0, %v1369_v2  ;;  %v906_v59 = vadd.f32 %v905_v38, %v1903_v23  ;;  %v661_v7 = vmul.f32 %v645_v5, %v629_v4 }
 0x15d   : > { %v1371_v56 = vpop.eup %1370  ;;  %v821_v9 = vadd.f32 %v805_v30, %v741_v32  ;;  %v790_v44 = vmul.f32 %v774_v34, %v1946_v19  ;;  %v472_v63 = vadd.f32 %v1843_v0, %v1847_v37  ;;  %v584_v26 = vadd.f32 %v568_v46, %v1925_v60 }
 0x15e   : > { %v759_v45 = vmul.f32 %v1371_v56, %v1371_v56  ;;  %v647_v14 = vadd.f32 1.0, %v1371_v56  ;;  %v478_v10 = vadd.f32 %v1857_v18, %v1847_v37  ;;  %v727_v11 = vmul.f32 0.7978846, %v711_v43 }
 0x15f   : > { %v837_v13 = vmul.f32 %v821_v9, %v466_v40  ;;  %v806_v3 = vmul.f32 %v790_v44, %v726_v41  ;;  %v1964_v54 = vadd.f32 %v849_v50, %v848_v33  ;;  %v913_v2 = vadd.f32 %v912_v61, %v911_v12 }
 0x160   : > { %v775_v62 = vsub.f32 1.0, %v759_v45  ;;  %v660_v23 = vmul.f32 %v1919_v52, %v1909_v24  ;;  %v1970_v4 = vadd.f32 %v1885_v51, %v1781_v48  ;;  %v856_v0 = vrot.slane %v855_v53, 4  ;;  %v511_v24 = vpop.f32.mrf.mxu0 }
 0x161   : > { %v918_v57 = vadd.f32 %v837_v13, %v836_v1  ;;  %v742_v5 = vmul.f32 0.5, %v646_v58  ;;  %v743_v16 = vmul.f32 0.5, %v647_v14  ;;  %v907_v20 = vrot.slane %v906_v59, 2 }
 0x162   : > { %v791_v28 = vmul.f32 %v775_v62, %v631_v55  ;;  %v862_v18 = vadd.f32 %v661_v7, %v660_v23  ;;  %v600_v21 = vmul.f32 0.7978846, %v584_v26  ;;  %v537_v47 = vmul.f32 0.044715, %v1970_v4  ;;  %v1989_v43 = vpop.f32.mrf.mxu0 }
 0x163   : > { %v919_v25 = vrot.slane %v918_v57, 4  ;;  %v822_v27 = vadd.f32 %v806_v3, %v742_v5  ;;  %v1975_v12 = vadd.f32 %v1905_v29, %v1781_v48  ;;  %v851_v51 = vrot.slane %v1964_v54, 2 }
 0x164   : > { %v807_v17 = vmul.f32 %v791_v28, %v727_v11  ;;  %v914_v52 = vrot.slane %v913_v2, 2  ;;  %v553_v30 = vmul.f32 %v537_v47, %v1970_v4  ;;  %v1981_v33 = vadd.f32 %v1929_v8, %v1781_v48 }
 0x165   : > { %v1983_v22 = vadd.f32 %v856_v0, %v855_v53  ;;  %v680_v35 = vmul.f32 0.134145, %v1925_v60  ;;  %v538_v56 = vmul.f32 0.044715, %v1975_v12  ;;  %v908_v40 = vadd.f32 %v907_v20, %v906_v59 }
 0x166   : > { %v823_v32 = vadd.f32 %v807_v17, %v743_v16  ;;  %v663_v29 = vmul.f32 %v647_v14, %v631_v55  ;;  %1372 = vtanh.f32 %v600_v21  ;;  %v569_v9 = vmul.f32 %v553_v30, %v1970_v4 }
 0x167   : > { %v863_v41 = vrot.slane %v862_v18, 4  ;;  %v920_v38 = vadd.f32 %v919_v25, %v918_v57  ;;  %v838_v42 = vmul.f32 %v822_v27, %v472_v63  ;;  %v554_v1 = vmul.f32 %v538_v56, %v1975_v12  ;;  %v517_v63 = vpop.f32.mrf.mxu0 }
 0x168   : > { %v839_v34 = vmul.f32 %v823_v32, %v478_v10  ;;  %v915_v8 = vadd.f32 %v914_v52, %v913_v2  ;;  %v662_v13 = vmul.f32 %v646_v58, %v1946_v19  ;;  %v585_v44 = vadd.f32 %v569_v9, %v1970_v4 }
 0x169   : > { %v539_v45 = vmul.f32 0.044715, %v1981_v33  ;;  %v858_v46 = vrot.slane %v1983_v22, 2  ;;  %v696_v53 = vmul.f32 %v680_v35, %v1925_v60  ;;  %v570_v61 = vmul.f32 %v554_v1, %v1975_v12  ;;  %v2019_v21 = vpop.f32.mrf.mxu0 }
 0x16a   : > { %v925_v50 = vadd.f32 %v839_v34, %v838_v42  ;;  %v909_v55 = vrot.slane %v908_v40, 1  ;;  %v869_v57 = vadd.f32 %v663_v29, %v662_v13  ;;  %v601_v14 = vmul.f32 0.7978846, %v585_v44 }
 0x16b   : > { %v555_v62 = vmul.f32 %v539_v45, %v1981_v33  ;;  %v1998_v59 = vadd.f32 %v863_v41, %v862_v18  ;;  %v921_v7 = vrot.slane %v920_v38, 2  ;;  %v586_v19 = vadd.f32 %v570_v61, %v1975_v12 }
 0x16c   : > { %v2003_v58 = vadd.f32 %v1953_v36, %v1781_v48  ;;  %v916_v26 = vrot.slane %v915_v8, 1  ;;  %1374 = vtanh.f32 %v601_v14  ;;  %v681_v3 = vmul.f32 0.134145, %v1970_v4 }
 0x16d   : > { %v571_v10 = vmul.f32 %v555_v62, %v1981_v33  ;;  %v926_v11 = vrot.slane %v925_v50, 4  ;;  %v712_v28 = vadd.f32 1.0, %v696_v53  ;;  %v602_v2 = vmul.f32 0.7978846, %v586_v19 }
 0x16e   : > { %v540_v23 = vmul.f32 0.044715, %v2003_v58  ;;  %v2008_v0 = vadd.f32 %v909_v55, %v908_v40  ;;  %v870_v5 = vrot.slane %v869_v57, 4  ;;  %v682_v16 = vmul.f32 0.134145, %v1975_v12 }
 0x16f   : > { %v587_v36 = vadd.f32 %v571_v10, %v1981_v33  ;;  %v922_v17 = vadd.f32 %v921_v7, %v920_v38  ;;  %v2014_v20 = vadd.f32 %v1878_v39, %v1847_v37  ;;  %1376 = vtanh.f32 %v602_v2  ;;  %v523_v38 = vpop.f32.mrf.mxu0 }
 0x170   : > { %v2017_v18 = vadd.f32 %v511_v24, %v1781_v48  ;;  %v865_v47 = vrot.slane %v1998_v59, 2  ;;  %v2023_v25 = vmul.f32 0.5, %v1925_v60  ;;  %v556_v32 = vmul.f32 %v540_v23, %v2003_v58 }
 0x171   : > { %v603_v27 = vmul.f32 0.7978846, %v587_v36  ;;  %v2026_v52 = vadd.f32 %v916_v26, %v915_v8  ;;  %v927_v30 = vadd.f32 %v926_v11, %v925_v50  ;;  %v2028_v34 = vmul.f32 0.7978846, %v712_v28 }
 0x172   : > { %v697_v39 = vmul.f32 %v681_v3, %v1970_v4  ;;  %v2031_v35 = vadd.f32 %v870_v5, %v869_v57  ;;  %v698_v24 = vmul.f32 %v682_v16, %v1975_v12  ;;  %v572_v56 = vmul.f32 %v556_v32, %v2003_v58 }
 0x173   : > { %1378 = vtanh.f32 %v603_v27  ;;  %v1373_v40 = vpop.eup %1372  ;;  %v923_v60 = vrot.slane %v922_v17, 1  ;;  %v2037_v29 = vadd.f32 %v1895_v6, %v1847_v37  ;;  %v2040_v9 = vmul.f32 0.5, %v1970_v4 }
 0x174   : > { %v541_v41 = vmul.f32 0.044715, %v2017_v18  ;;  %v2045_v42 = vadd.f32 %v1917_v49, %v1847_v37  ;;  %v2048_v1 = vmul.f32 0.5, %v1975_v12  ;;  %v683_v8 = vmul.f32 0.134145, %v1981_v33 }
 0x175   : > { %v588_v13 = vadd.f32 %v572_v56, %v2003_v58  ;;  %v928_v44 = vrot.slane %v927_v30, 2  ;;  %v713_v6 = vadd.f32 1.0, %v697_v39  ;;  %v2054_v4 = vadd.f32 %v517_v63, %v1781_v48 }
 0x176   : > { %v557_v45 = vmul.f32 %v541_v41, %v2017_v18  ;;  %v760_v50 = vmul.f32 %v1373_v40, %v1373_v40  ;;  %v714_v53 = vadd.f32 1.0, %v698_v24  ;;  %v2057_v49 = vadd.f32 %v523_v38, %v1781_v48 }
 0x177   : > { %v604_v61 = vmul.f32 0.7978846, %v588_v13  ;;  %v2059_v55 = vadd.f32 %v923_v60, %v922_v17  ;;  %v2063_v12 = vadd.f32 %v1940_v31, %v1847_v37  ;;  %v542_v14 = vmul.f32 0.044715, %v2054_v4 }
 0x178   : > { %v573_v57 = vmul.f32 %v557_v45, %v2017_v18  ;;  %v699_v62 = vmul.f32 %v683_v8, %v1981_v33  ;;  %v684_v7 = vmul.f32 0.134145, %v2003_v58  ;;  %v543_v19 = vmul.f32 0.044715, %v2057_v49 }
 0x179   : > { %1380 = vtanh.f32 %v604_v61  ;;  %v1375_v63 = vpop.eup %1374  ;;  %v929_v48 = vadd.f32 %v928_v44, %v927_v30  ;;  %v729_v26 = vmul.f32 0.7978846, %v713_v6  ;;  %v558_v10 = vmul.f32 %v542_v14, %v2054_v4 }
 0x17a   : > { %v589_v3 = vadd.f32 %v573_v57, %v2017_v18  ;;  %v776_v31 = vsub.f32 1.0, %v760_v50  ;;  %v761_v11 = vmul.f32 %v1375_v63, %v1375_v63  ;;  %v730_v28 = vmul.f32 0.7978846, %v714_v53 }
 0x17b   : > { %v2073_v2 = vmul.f32 0.5, %v1981_v33  ;;  %v648_v23 = vadd.f32 1.0, %v1373_v40  ;;  %v574_v16 = vmul.f32 %v558_v10, %v2054_v4  ;;  %v559_v36 = vmul.f32 %v543_v19, %v2057_v49 }
 0x17c   : > { %v605_v5 = vmul.f32 0.7978846, %v589_v3  ;;  %v1377_v17 = vpop.eup %1376  ;;  %v777_v27 = vsub.f32 1.0, %v761_v11  ;;  %v715_v32 = vadd.f32 1.0, %v699_v62  ;;  %v2079_v30 = vadd.f32 %v1962_v15, %v1847_v37 }
 0x17d   : > { %v700_v39 = vmul.f32 %v684_v7, %v2003_v58  ;;  %v930_v24 = vrot.slane %v929_v48, 1  ;;  %v762_v56 = vmul.f32 %v1377_v17, %v1377_v17  ;;  %v590_v33 = vadd.f32 %v574_v16, %v2054_v4 }
 0x17e   : > { %1382 = vtanh.f32 %v605_v5  ;;  %v792_v40 = vmul.f32 %v776_v31, %v2023_v25  ;;  %v649_v60 = vadd.f32 1.0, %v1375_v63  ;;  %v793_v41 = vmul.f32 %v777_v27, %v2040_v9 }
 0x17f   : > { %v575_v38 = vmul.f32 %v559_v36, %v2057_v49  ;;  %v664_v13 = vmul.f32 %v648_v23, %v2023_v25  ;;  %v778_v15 = vsub.f32 1.0, %v762_v56  ;;  %v636_v44 = vmul.f32 0.5, %v2003_v58 }
 0x180   : > { %v1379_v8 = vpop.eup %1378  ;;  %v606_v6 = vmul.f32 0.7978846, %v590_v33  ;;  %v744_v45 = vmul.f32 0.5, %v648_v23  ;;  %v809_v50 = vmul.f32 %v793_v41, %v729_v26  ;;  %v685_v61 = vmul.f32 0.134145, %v2017_v18 }
 0x181   : > { %v763_v53 = vmul.f32 %v1379_v8, %v1379_v8  ;;  %v794_v57 = vmul.f32 %v778_v15, %v2048_v1  ;;  %v731_v14 = vmul.f32 0.7978846, %v715_v32  ;;  %v591_v62 = vadd.f32 %v575_v38, %v2057_v49 }
 0x182   : > { %1384 = vtanh.f32 %v606_v6  ;;  %v931_v7 = vadd.f32 %v930_v24, %v929_v48  ;;  %v808_v19 = vmul.f32 %v792_v40, %v2028_v34  ;;  %v745_v25 = vmul.f32 0.5, %v649_v60 }
 0x183   : > { %v716_v63 = vadd.f32 1.0, %v700_v39  ;;  %v650_v3 = vadd.f32 1.0, %v1377_v17  ;;  %v651_v58 = vadd.f32 1.0, %v1379_v8  ;;  %v779_v10 = vsub.f32 1.0, %v763_v53 }
 0x184   : > { %v607_v31 = vmul.f32 0.7978846, %v591_v62  ;;  %v825_v26 = vadd.f32 %v809_v50, %v745_v25  ;;  %v701_v11 = vmul.f32 %v685_v61, %v2017_v18  ;;  %v686_v23 = vmul.f32 0.134145, %v2054_v4 }
 0x185   : > { %v991_v5 = vsel %vm968_vm1, %v2026_v52, %v2008_v0  ;;  %v810_v36 = vmul.f32 %v794_v57, %v730_v28  ;;  %v795_v48 = vmul.f32 %v779_v10, %v2073_v2  ;;  %v2100_v34 = vadd.f32 %v1989_v43, %v1847_v37 }
 0x186   : > { %v1381_v16 = vpop.eup %1380  ;;  %1386 = vtanh.f32 %v607_v31  ;;  %v824_v17 = vadd.f32 %v808_v19, %v744_v45  ;;  %v665_v27 = vmul.f32 %v649_v60, %v2040_v9  ;;  %v637_v39 = vmul.f32 0.5, %v2017_v18 }
 0x187   : > { %v764_v32 = vmul.f32 %v1381_v16, %v1381_v16  ;;  %v746_v24 = vmul.f32 0.5, %v650_v3  ;;  %v747_v56 = vmul.f32 0.5, %v651_v58  ;;  %v811_v33 = vmul.f32 %v795_v48, %v731_v14 }
 0x188   : > { %v992_v0 = vsel %vm970_vm2, %v2059_v55, %v991_v5  ;;  %v841_v52 = vmul.f32 %v825_v26, %v2037_v29  ;;  %v717_v28 = vadd.f32 1.0, %v701_v11  ;;  %v702_v40 = vmul.f32 %v686_v23, %v2054_v4 }
 0x189   : > { %v687_v43 = vmul.f32 0.134145, %v2057_v49  ;;  %v826_v41 = vadd.f32 %v810_v36, %v746_v24  ;;  %v827_v38 = vadd.f32 %v811_v33, %v747_v56  ;;  %v780_v8 = vsub.f32 1.0, %v764_v32 }
 0x18a   : > { %v2110_v9 = vsel %vm972_vm3, %v931_v7, %v992_v0  ;;  %v840_v60 = vmul.f32 %v824_v17, %v2014_v20  ;;  %v876_v15 = vadd.f32 %v665_v27, %v664_v13  ;;  %v667_v6 = vmul.f32 %v651_v58, %v2073_v2 }
 0x18b   : > { %v1383_v18 = vpop.eup %1382  ;;  %v652_v55 = vadd.f32 1.0, %v1381_v16  ;;  %v843_v29 = vmul.f32 %v827_v38, %v2063_v12  ;;  %v796_v45 = vmul.f32 %v780_v8, %v636_v44  ;;  %v666_v61 = vmul.f32 %v650_v3, %v2048_v1 }
 0x18c   : > { %v653_v50 = vadd.f32 1.0, %v1383_v18  ;;  %v765_v53 = vmul.f32 %v1383_v18, %v1383_v18  ;;  %v732_v57 = vmul.f32 0.7978846, %v716_v63  ;;  %v638_v14 = vmul.f32 0.5, %v2054_v4 }
 0x18d   : > { %v718_v62 = vadd.f32 1.0, %v702_v40  ;;  %v932_v7 = vadd.f32 %v841_v52, %v840_v60  ;;  %v842_v19 = vmul.f32 %v826_v41, %v2045_v42  ;;  %v703_v20 = vmul.f32 %v687_v43, %v2057_v49 }
 0x18e   : > { %v669_v25 = vmul.f32 %v653_v50, %v637_v39  ;;  %v668_v2 = vmul.f32 %v652_v55, %v636_v44  ;;  %v812_v58 = vmul.f32 %v796_v45, %v732_v57  ;;  %v781_v10 = vsub.f32 1.0, %v765_v53 }
 0x18f   : > { %v1385_v13 = vpop.eup %1384  ;;  %v639_v12 = vmul.f32 0.5, %v2057_v49  ;;  %v877_v31 = vrot.slane %v876_v15, 4  ;;  %v883_v26 = vadd.f32 %v667_v6, %v666_v61  ;;  %v939_v11 = vadd.f32 %v843_v29, %v842_v19 }
 0x190   : > { %v733_v1 = vmul.f32 0.7978846, %v717_v28  ;;  %v748_v63 = vmul.f32 0.5, %v652_v55  ;;  %v797_v3 = vmul.f32 %v781_v10, %v637_v39  ;;  %v890_v4 = vadd.f32 %v669_v25, %v668_v2 }
 0x191   : > { %v766_v23 = vmul.f32 %v1385_v13, %v1385_v13  ;;  %v933_v5 = vrot.slane %v932_v7, 4  ;;  %v654_v16 = vadd.f32 1.0, %v1385_v13  ;;  %v734_v42 = vmul.f32 0.7978846, %v718_v62 }
 0x192   : > { %v719_v36 = vadd.f32 1.0, %v703_v20  ;;  %v828_v17 = vadd.f32 %v812_v58, %v748_v63  ;;  %v749_v27 = vmul.f32 0.5, %v653_v50  ;;  %v813_v44 = vmul.f32 %v797_v3, %v733_v1 }
 0x193   : > { %v1387_v48 = vpop.eup %1386  ;;  %v782_v32 = vsub.f32 1.0, %v766_v23  ;;  %v878_v24 = vadd.f32 %v877_v31, %v876_v15  ;;  %v940_v56 = vrot.slane %v939_v11, 4  ;;  %v884_v0 = vrot.slane %v883_v26, 4  ;;  %v525_v15 = vpop.f32.mrf.mxu0 }
 0x194   : > { %v655_v49 = vadd.f32 1.0, %v1387_v48  ;;  %v767_v33 = vmul.f32 %v1387_v48, %v1387_v48  ;;  %v829_v52 = vadd.f32 %v813_v44, %v749_v27  ;;  %v891_v40 = vrot.slane %v890_v4, 4 }
 0x195   : > { %v798_v28 = vmul.f32 %v782_v32, %v638_v14  ;;  %v670_v39 = vmul.f32 %v654_v16, %v638_v14  ;;  %v735_v41 = vmul.f32 0.7978846, %v719_v36  ;;  %v934_v8 = vadd.f32 %v933_v5, %v932_v7 }
 0x196   : > { %v671_v43 = vmul.f32 %v655_v49, %v639_v12  ;;  %v783_v38 = vsub.f32 1.0, %v767_v33  ;;  %v844_v18 = vmul.f32 %v828_v17, %v2079_v30  ;;  %v845_v60 = vmul.f32 %v829_v52, %v2100_v34 }
 0x197   : > { %v814_v6 = vmul.f32 %v798_v28, %v734_v42  ;;  %v941_v55 = vadd.f32 %v940_v56, %v939_v11  ;;  %v750_v29 = vmul.f32 0.5, %v654_v16  ;;  %v872_v53 = vrot.slane %v2031_v35, 2 }
 0x198   : > { %v799_v45 = vmul.f32 %v783_v38, %v639_v12  ;;  %v897_v50 = vadd.f32 %v671_v43, %v670_v39  ;;  %v885_v61 = vadd.f32 %v884_v0, %v883_v26  ;;  %v946_v57 = vadd.f32 %v845_v60, %v844_v18 }
 0x199   : > { %v892_v62 = vadd.f32 %v891_v40, %v890_v4  ;;  %v830_v14 = vadd.f32 %v814_v6, %v750_v29  ;;  %v751_v19 = vmul.f32 0.5, %v655_v49  ;;  %v935_v7 = vrot.slane %v934_v8, 2 }
 0x19a   : > { %v815_v25 = vmul.f32 %v799_v45, %v735_v41  ;;  %v898_v20 = vrot.slane %v897_v50, 4  ;;  %v947_v13 = vrot.slane %v946_v57, 4  ;;  %v520_v30 = vadd.f32 %v2019_v21, %v1847_v37 }
 0x19b   : > { %v526_v34 = vadd.f32 %v525_v15, %v1847_v37  ;;  %v879_v2 = vrot.slane %v878_v24, 2  ;;  %v942_v58 = vrot.slane %v941_v55, 2  ;;  %v852_v31 = vadd.f32 %v851_v51, %v1964_v54 }
 0x19c   : > { %v831_v10 = vadd.f32 %v815_v25, %v751_v19  ;;  %v899_v12 = vadd.f32 %v898_v20, %v897_v50  ;;  %v859_v26 = vadd.f32 %v858_v46, %v1983_v22  ;;  %v948_v11 = vadd.f32 %v947_v13, %v946_v57 }
 0x19d   : > { %v886_v1 = vrot.slane %v885_v61, 2  ;;  %v866_v21 = vadd.f32 %v865_v47, %v1998_v59  ;;  %v846_v63 = vmul.f32 %v830_v14, %v520_v30  ;;  %v893_v3 = vrot.slane %v892_v62, 2 }
 0x19e   : > { %v847_v37 = vmul.f32 %v831_v10, %v526_v34  ;;  %v873_v4 = vadd.f32 %v872_v53, %v2031_v35  ;;  %v936_v23 = vadd.f32 %v935_v7, %v934_v8  ;;  %v949_v5 = vrot.slane %v948_v11, 2 }
 0x19f   : > { %v900_v16 = vrot.slane %v899_v12, 2  ;;  %v943_v42 = vadd.f32 %v942_v58, %v941_v55  ;;  %v880_v51 = vadd.f32 %v879_v2, %v878_v24  ;;  %v860_v36 = vrot.slane %v859_v26, 1 }
 0x1a0   : > { %v953_v54 = vadd.f32 %v847_v37, %v846_v63  ;;  %v950_v48 = vadd.f32 %v949_v5, %v948_v11  ;;  %v887_v22 = vadd.f32 %v886_v1, %v885_v61  ;;  %v867_v46 = vrot.slane %v866_v21, 1 }
 0x1a1   : > { %v894_v27 = vadd.f32 %v893_v3, %v892_v62  ;;  %v853_v44 = vrot.slane %v852_v31, 1  ;;  %v937_v32 = vrot.slane %v936_v23, 1  ;;  %v874_v59 = vrot.slane %v873_v4, 1 }
 0x1a2   : > { %v954_v17 = vrot.slane %v953_v54, 4  ;;  %v901_v47 = vadd.f32 %v900_v16, %v899_v12  ;;  %v944_v56 = vrot.slane %v943_v42, 1  ;;  %v881_v33 = vrot.slane %v880_v51, 1 }
 0x1a3   : > { %v861_v35 = vadd.f32 %v860_v36, %v859_v26  ;;  %v951_v0 = vrot.slane %v950_v48, 1  ;;  %v888_v52 = vrot.slane %v887_v22, 1  ;;  %v868_v40 = vadd.f32 %v867_v46, %v866_v21 }
 0x1a4   : > { %v955_v49 = vadd.f32 %v954_v17, %v953_v54  ;;  %v895_v39 = vrot.slane %v894_v27, 1  ;;  %v854_v24 = vadd.f32 %v853_v44, %v852_v31  ;;  %v938_v43 = vadd.f32 %v937_v32, %v936_v23 }
 0x1a5   : > { %v875_v41 = vadd.f32 %v874_v59, %v873_v4  ;;  %v902_v38 = vrot.slane %v901_v47, 1  ;;  %v945_v8 = vadd.f32 %v944_v56, %v943_v42  ;;  %v882_v60 = vadd.f32 %v881_v33, %v880_v51 }
 0x1a6   : > { %v956_v28 = vrot.slane %v955_v49, 2  ;;  %v952_v6 = vadd.f32 %v951_v0, %v950_v48  ;;  %v889_v55 = vadd.f32 %v888_v52, %v887_v22  ;;  %v969_v29 = vsel %vm968_vm1, %v861_v35, %v854_v24 }
 0x1a7   : > { %v896_v45 = vadd.f32 %v895_v39, %v894_v27  ;;  %v971_v50 = vsel %vm970_vm2, %v868_v40, %v969_v29  ;;  %v994_v53 = vsel %vm974_vm4, %v938_v43, %v2110_v9  ;;  %v903_v61 = vadd.f32 %v902_v38, %v901_v47  ;;  %v1242_v9 = vld [vmem:[%s2183_s4] ss:$0 sm:$0xff] }
 0x1a8   : > { %v957_v18 = vadd.f32 %v956_v28, %v955_v49  ;;  %v973_v57 = vsel %vm972_vm3, %v875_v41, %v971_v50  ;;  %v995_v14 = vsel %vm976_vm5, %v945_v8, %v994_v53 }
 0x1a9   : > { %v975_v19 = vsel %vm974_vm4, %v882_v60, %v973_v57  ;;  %v996_v25 = vsel %vm978_vm6, %v952_v6, %v995_v14 }
 0x1aa   : > { %v958_v15 = vrot.slane %v957_v18, 1  ;;  %v977_v20 = vsel %vm976_vm5, %v889_v55, %v975_v19 }
 0x1ab   : > { %v979_v13 = vsel %vm978_vm6, %v896_v45, %v977_v20 }
 0x1ac   : > { %v959_v62 = vadd.f32 %v958_v15, %v957_v18  ;;  %v981_v30 = vsel %vm980_vm7, %v903_v61, %v979_v13 }
 0x1ae   : > { %v997_v7 = vsel %vm980_vm7, %v959_v62, %v996_v25 }
 0x1af   : > { %1102 = vmatprep.mubr.f32.mxu1 %v997_v7 }
 0x1b0   : > { %1103 = vmatmul.mubr.f32.vlgmr.msra.gmra.mxu1 %v981_v30 }
 0x270   : > { %v1281_v34 = vpop.f32.mrf.mxu1 }
 0x272   : > { %v1282_v2 = vpop.f32.mrf.mxu1 }
 0x273   : > { %v1283_v58 = vadd.f32 %v1282_v2, %v1281_v34 }
 0x275   : > { %v1105_v10 = vadd.f32 %v1283_v58, %v1242_v9 }
 0x277   : > { %1108 = vst [vmem:[%s272_s16] sm:$0xff] %v1105_v10 }
 0x278   : > { %1481 = shalt.err (!%p1478_p9)
}
 0x279   : > { %s1482_s24 = scalar_lea.hbm %s1121_s27, 128  ;;  %s1486_s14 = scalar_lea.hbm %s2184_s5, 256 }
 0x27a   : > { %p1483_p13 = scmp.ne.s32.totalorder %s1121_s27, %s1482_s24  ;;  %p1487_p4 = scmp.lt.s32.totalorder %s1121_s27, %s2184_s5 }
 0x27b   : > { %p1488_p8 = scmp.lt.s32.totalorder %s1486_s14, %s1482_s24 }
 0x27c   : > { %p1484_p5 = pnand %p1483_p13, %p2202_p10 }
 0x27d   : > { %p1489_p7 = por %p1488_p8, %p1487_p4 }
 0x27e   : > { %p1485_p0 = pneg %p1484_p5 }
 0x280   : > { %p1490_p11 = pnand %p1489_p7, %p1485_p0 }
 0x282   : > { %1493 = shalt.err (!%p1490_p11)
}
 0x283   : > { %1294 = dma.vmem_to_hbm [thread:$0]  (%p2202_p10), %s1124_s9, 128, %s1121_s27, %s1110_s23  }
 0x284 PF: > { %s1135_s15 = sand.u32 1, %s1524_s18   ;;  %p2203_p1 = scmp.ne.s32.totalorder %s2191_s25, 0 }
 0x285   : > { %p2204_p2 = scmp.ge.s32.totalorder %s1536_s21, 2  ;;  %s1136_s16 = scalar_lea.sflag [#allocation4], %s1135_s15 }
 0x287   : > { %p1308_p6 = pnand %p2204_p2, %p2203_p1 }
 0x289   : > { %p1309_p12 = pneg %p1308_p6 }
 0x28b   : > { %1519 = dma.done.wait (%p1309_p12), %s1136_s16, 128  }
 0x28c   : > { %1521 = vsyncadd (%p1309_p12), %s1136_s16, 4294967168  ;;  %p19_p3 = scmp.ge.s32.totalorder %s1652_s17, 4   ;;  %s2205_s18 = smov %s1528_s19 }
 0x28d   : > { %s2206_s19 = smov %s1532_s20  ;;  %s2207_s20 = smov %s1661_s28 }
 0x28e   : > { %s2208_s21 = smov %s1652_s17  ;;  %21 = sbr.rel (!%p19_p3) target bundleno = 6 (0x6), region = 93 }
 0x293   :  { %1141 = vsyncpa [#allocation3], 1 }
 0x294   :  { %1143 = vsyncpa [#allocation3 + $0x1], 1 }
 0x295   :  { %1144 = vsyncpa [#allocation6], 1 }
 0x296   :  { %1145 = vsyncpa [#allocation4], 1 }
 0x297   :  { %1147 = vsyncpa [#allocation4 + $0x1], 1 }

</bundles_post_ra>
